<compile_context>
chip_gen: v6e
topology: v6e:2x2x1
jax: 0.10.0
libtpu: 0.0.40
codegen_flags: <defaults>
</compile_context>

<pallas_src>
import functools

import jax
import jax.numpy as jnp
from jax import lax
from jax.experimental import pallas as pl
from jax.experimental.pallas import tpu as pltpu


# ----------------------------------------------------------------------------
# Kernel: single grid step, whole batch fused (QKV proj -> attention per
# (batch, head) -> accumulated output projection + bias).
# ----------------------------------------------------------------------------
def _mha_fused_kernel(x_ref, wqkv_ref, wproj_ref, bproj_ref, o_ref,
                      *, batch: int, seq: int, n_embed: int, n_heads: int,
                      head_size: int, section: int):
    x = x_ref[...]            # (B*T, C)            bf16
    w_qkv = wqkv_ref[...]     # (C, 3*section)      bf16 (Q cols pre-scaled)
    w_proj = wproj_ref[...]   # (n_heads, H, C)     f32
    b_proj = bproj_ref[...]   # (1, C)              f32

    # Fused Q/K/V projection for the whole (B*T) token slab: one lane-dense
    # MXU matmul with f32 accumulation.
    qkv = jnp.dot(x, w_qkv, preferred_element_type=jnp.float32)  # (B*T, 3*sec)

    # Causal additive mask built in-kernel (VPU slack), no HBM traffic.
    row = lax.broadcasted_iota(jnp.int32, (seq, seq), 0)
    col = lax.broadcasted_iota(jnp.int32, (seq, seq), 1)
    mask = jnp.where(row >= col, 0.0, -jnp.inf).astype(jnp.float32)  # (T, T)

    for b in range(batch):                       # static unroll (B tiny)
        r0 = b * seq
        acc = jnp.zeros((seq, n_embed), jnp.float32)
        for h in range(n_heads):                 # static unroll (n_heads small)
            c0 = h * head_size
            # bf16 MXU operands, f32 accumulation.
            q = qkv[r0:r0 + seq, c0:c0 + head_size].astype(jnp.bfloat16)
            k = qkv[r0:r0 + seq,
                    section + c0:section + c0 + head_size].astype(jnp.bfloat16)
            v = qkv[r0:r0 + seq,
                    2 * section + c0:2 * section + c0 + head_size].astype(jnp.bfloat16)

            # q @ k^T without materializing a transpose; scale already folded
            # into the Q projection weights.
            s = lax.dot_general(q, k, (((1,), (1,)), ((), ())),
                                preferred_element_type=jnp.float32)   # (T, T)
            s = s + mask

            # Numerically-stable softmax in f32; divide on the EUP slot.
            m = jnp.max(s, axis=-1, keepdims=True)
            e = jnp.exp(s - m)
            denom = jnp.sum(e, axis=-1, keepdims=True)
            wei = e * pl.reciprocal(denom, approx=True)

            out_h = jnp.dot(wei.astype(jnp.bfloat16), v,
                            preferred_element_type=jnp.float32)       # (T, H)

            # Per-head accumulating output projection (replaces concat +
            # bf16 re-cast + one big matmul); out_h stays f32.
            acc = acc + jnp.dot(out_h, w_proj[h],
                                preferred_element_type=jnp.float32)   # (T, C)

        # Direct sublane-aligned store of this batch element's rows.
        # TODO(synk): nn.Dropout is identity at inference; not applied here.
        o_ref[r0:r0 + seq, :] = (acc + b_proj).astype(o_ref.dtype)


def multi_head_attention(x, wq, wk, wv, w_proj, b_proj):
    """Forward pass of MultiHeadAttention (eval mode).

    x:        (B, T, C) float32
    wq/wk/wv: (n_heads, C, H) float32  (per-head Linear, bias=False, pre-transposed)
    w_proj:   (n_heads*H, C) float32   (proj Linear, pre-transposed)
    b_proj:   (1, C) float32
    returns   (B, T, C) float32
    """
    B, T, C = x.shape
    n_heads, _, H = wq.shape
    NH = n_heads * H
    # Pad each Q/K/V section of the fused weight to a 128-lane boundary.
    section = ((NH + 127) // 128) * 128
    scale = H ** (-0.5)

    # ---- Host-side (one-time) prep.
    def _flat(w):  # (n_heads, C, H) -> (C, NH) head-major, padded to (C, section)
        m = jnp.transpose(w, (1, 0, 2)).reshape(C, NH)
        return jnp.pad(m, ((0, 0), (0, section - NH)))

    # Fold the attention scale into the Q columns; cast fused weight to bf16.
    w_qkv = jnp.concatenate([_flat(wq * scale), _flat(wk), _flat(wv)], axis=1)
    w_qkv = w_qkv.astype(jnp.bfloat16)                      # (C, 3*section)

    w_proj3 = w_proj.reshape(n_heads, H, C).astype(jnp.float32)  # (nh, H, C)
    b_proj2 = b_proj.reshape(1, C).astype(jnp.float32)
    x_flat = x.reshape(B * T, C).astype(jnp.bfloat16)

    kernel = functools.partial(
        _mha_fused_kernel, batch=B, seq=T, n_embed=C,
        n_heads=n_heads, head_size=H, section=section)

    # Note: output block is (B*T, C) with C=32 (<128 lanes -> masked vst);
    # at 2 KiB total this is negligible, so no lane-dense repack is done.
    out = pl.pallas_call(
        kernel,
        out_shape=jax.ShapeDtypeStruct((B * T, C), jnp.float32),
        grid_spec=pltpu.PrefetchScalarGridSpec(
            num_scalar_prefetch=0,
            grid=(1,),                                       # single step
            in_specs=[
                pl.BlockSpec((B * T, C), lambda i: (0, 0)),          # x (flat)
                pl.BlockSpec((C, 3 * section), lambda i: (0, 0)),    # fused W_qkv
                pl.BlockSpec((n_heads, H, C), lambda i: (0, 0, 0)),  # W_proj (per-head)
                pl.BlockSpec((1, C), lambda i: (0, 0)),              # b_proj
            ],
            out_specs=pl.BlockSpec((B * T, C), lambda i: (0, 0)),
        ),
    )(x_flat, w_qkv, w_proj3, b_proj2)

    return out.reshape(B, T, C)


# ----------------------------------------------------------------------------
# Pure-JAX reference (faithful to the PyTorch module), using bf16-rounded
# inputs like the kernel sees so the comparison isolates kernel bugs.
# ----------------------------------------------------------------------------
def _reference(x, wq, wk, wv, w_proj, b_proj):
    B, T, C = x.shape
    n_heads, _, H = wq.shape
    xb = x.astype(jnp.bfloat16).astype(jnp.float32)
    wqb = wq.astype(jnp.bfloat16).astype(jnp.float32)
    wkb = wk.astype(jnp.bfloat16).astype(jnp.float32)
    wvb = wv.astype(jnp.bfloat16).astype(jnp.float32)
    wpb = w_proj.astype(jnp.float32)

    outs = []
    mask = jnp.tril(jnp.ones((T, T), dtype=bool))
    for h in range(n_heads):
        q = xb @ wqb[h]
        k = xb @ wkb[h]
        v = xb @ wvb[h]
        wei = (q @ jnp.swapaxes(k, -2, -1)) * (H ** -0.5)
        wei = jnp.where(mask, wei, -jnp.inf)
        wei = jax.nn.softmax(wei, axis=-1)
        outs.append(wei @ v)
    cat = jnp.concatenate(outs, axis=-1)
    return cat @ wpb + b_proj.reshape(1, -1)


if __name__ == "__main__":
    # Small config consistent with the module:
    #   n_embed=32, n_heads=4, head_size=8, block_size=T=8, dropout=0.0
    B, T = 2, 8
    n_embed, n_heads, head_size = 32, 4, 8

    key = jax.random.PRNGKey(0)
    kx, kq, kk, kv, kp, kb = jax.random.split(key, 6)

    x = jax.random.normal(kx, (B, T, n_embed), dtype=jnp.float32)
    wq = jax.random.normal(kq, (n_heads, n_embed, head_size), dtype=jnp.float32) * 0.1
    wk = jax.random.normal(kk, (n_heads, n_embed, head_size), dtype=jnp.float32) * 0.1
    wv = jax.random.normal(kv, (n_heads, n_embed, head_size), dtype=jnp.float32) * 0.1
    w_proj = jax.random.normal(kp, (n_heads * head_size, n_embed), dtype=jnp.float32) * 0.1
    b_proj = jax.random.normal(kb, (1, n_embed), dtype=jnp.float32) * 0.1

    out = multi_head_attention(x, wq, wk, wv, w_proj, b_proj)
    out = jax.block_until_ready(out)

    ref = _reference(x, wq, wk, wv, w_proj, b_proj)
    assert out.shape == (B, T, n_embed)
    assert jnp.allclose(out, ref, atol=2e-2, rtol=2e-2), "mismatch vs reference"

    print("KERNEL_OK")
</pallas_src>

<mosaic_0001>
module attributes {stable_mosaic.version = 11 : i64} {
  func.func @_mha_fused_kernel(%arg0: i32, %arg1: memref<16x32xbf16, #tpu.memory_space<vmem>>, %arg2: memref<32x384xbf16, #tpu.memory_space<vmem>>, %arg3: memref<4x8x32xf32, #tpu.memory_space<vmem>>, %arg4: memref<1x32xf32, #tpu.memory_space<vmem>>, %arg5: memref<16x32xf32, #tpu.memory_space<vmem>>) attributes {dimension_semantics = [#tpu.dimension_semantics<arbitrary>], iteration_bounds = array<i64: 1>, scalar_prefetch = 0 : i64, scratch_operands = 0 : i64, tpu.core_type = #tpu.core_type<tc>, window_params = [{pipeline_mode = #tpu.pipeline_mode<synchronous>, transform_indices = @transform_0, window_bounds = array<i64: 16, 32>}, {pipeline_mode = #tpu.pipeline_mode<synchronous>, transform_indices = @transform_1, window_bounds = array<i64: 32, 384>}, {pipeline_mode = #tpu.pipeline_mode<synchronous>, transform_indices = @transform_2, window_bounds = array<i64: 4, 8, 32>}, {pipeline_mode = #tpu.pipeline_mode<synchronous>, transform_indices = @transform_3, window_bounds = array<i64: 1, 32>}, {pipeline_mode = #tpu.pipeline_mode<synchronous>, transform_indices = @transform_4, window_bounds = array<i64: 16, 32>}]} {
    %c0 = arith.constant 0 : index
    %c0_0 = arith.constant 0 : index
    %0 = vector.load %arg1[%c0, %c0_0] : memref<16x32xbf16, #tpu.memory_space<vmem>>, vector<16x32xbf16>
    %c0_1 = arith.constant 0 : index
    %c0_2 = arith.constant 0 : index
    %1 = vector.load %arg2[%c0_1, %c0_2] : memref<32x384xbf16, #tpu.memory_space<vmem>>, vector<32x384xbf16>
    %c0_3 = arith.constant 0 : index
    %c0_4 = arith.constant 0 : index
    %c0_5 = arith.constant 0 : index
    %2 = vector.load %arg3[%c0_3, %c0_4, %c0_5] : memref<4x8x32xf32, #tpu.memory_space<vmem>>, vector<4x8x32xf32>
    %c0_6 = arith.constant 0 : index
    %c0_7 = arith.constant 0 : index
    %3 = vector.load %arg4[%c0_6, %c0_7] : memref<1x32xf32, #tpu.memory_space<vmem>>, vector<1x32xf32>
    %cst = arith.constant dense<0.000000e+00> : vector<16x384xf32>
    %4 = tpu.matmul %0, %1, %cst {dimension_numbers = #tpu.dot_dimension_numbers<[1], [0], [0], [1], [0, 0, 1, 1], [], []>} : vector<16x32xbf16>, vector<32x384xbf16>, vector<16x384xf32> -> vector<16x384xf32>
    %5 = tpu.iota {dimensions = array<i32: 0>} : vector<8x8xi32>
    %6 = tpu.iota {dimensions = array<i32: 1>} : vector<8x8xi32>
    %7 = arith.cmpi sge, %5, %6 : vector<8x8xi32>
    %cst_8 = arith.constant 0.000000e+00 : f32
    %cst_9 = arith.constant 0xFF800000 : f32
    %8 = vector.broadcast %cst_8 : f32 to vector<8x8xf32>
    %9 = vector.broadcast %cst_9 : f32 to vector<8x8xf32>
    %10 = arith.select %7, %8, %9 : vector<8x8xi1>, vector<8x8xf32>
    %cst_10 = arith.constant 0.000000e+00 : f32
    %11 = vector.broadcast %cst_10 : f32 to vector<8x32xf32>
    %12 = vector.extract_strided_slice %4 {offsets = [0, 0], sizes = [8, 8], strides = [1, 1]} : vector<16x384xf32> to vector<8x8xf32>
    %13 = arith.truncf %12 : vector<8x8xf32> to vector<8x8xbf16>
    %14 = vector.extract_strided_slice %4 {offsets = [0, 128], sizes = [8, 8], strides = [1, 1]} : vector<16x384xf32> to vector<8x8xf32>
    %15 = arith.truncf %14 : vector<8x8xf32> to vector<8x8xbf16>
    %16 = vector.extract_strided_slice %4 {offsets = [0, 256], sizes = [8, 8], strides = [1, 1]} : vector<16x384xf32> to vector<8x8xf32>
    %17 = arith.truncf %16 : vector<8x8xf32> to vector<8x8xbf16>
    %cst_11 = arith.constant dense<0.000000e+00> : vector<8x8xf32>
    %18 = tpu.matmul %13, %15, %cst_11 {dimension_numbers = #tpu.dot_dimension_numbers<[1], [1], [0], [0], [0, 0, 1, 0], [], []>} : vector<8x8xbf16>, vector<8x8xbf16>, vector<8x8xf32> -> vector<8x8xf32>
    %19 = arith.addf %18, %10 : vector<8x8xf32>
    %cst_12 = arith.constant dense<0xFF800000> : vector<8xf32>
    %20 = vector.multi_reduction <maximumf>, %19, %cst_12 [1] : vector<8x8xf32> to vector<8xf32>
    %21 = vector.shape_cast %20 : vector<8xf32> to vector<8x1xf32>
    %22 = vector.broadcast %21 : vector<8x1xf32> to vector<8x8xf32>
    %23 = arith.subf %19, %22 : vector<8x8xf32>
    %24 = math.exp %23 : vector<8x8xf32>
    %cst_13 = arith.constant dense<0.000000e+00> : vector<8xf32>
    %25 = vector.multi_reduction <add>, %24, %cst_13 [1] : vector<8x8xf32> to vector<8xf32>
    %26 = vector.shape_cast %25 : vector<8xf32> to vector<8x1xf32>
    %27 = tpu.reciprocal %26 {approx = true} : vector<8x1xf32> -> vector<8x1xf32>
    %28 = vector.broadcast %27 : vector<8x1xf32> to vector<8x8xf32>
    %29 = arith.mulf %24, %28 : vector<8x8xf32>
    %30 = arith.truncf %29 : vector<8x8xf32> to vector<8x8xbf16>
    %cst_14 = arith.constant dense<0.000000e+00> : vector<8x8xf32>
    %31 = tpu.matmul %30, %17, %cst_14 {dimension_numbers = #tpu.dot_dimension_numbers<[1], [0], [0], [1], [0, 0, 1, 1], [], []>} : vector<8x8xbf16>, vector<8x8xbf16>, vector<8x8xf32> -> vector<8x8xf32>
    %32 = vector.extract_strided_slice %2 {offsets = [0, 0, 0], sizes = [1, 8, 32], strides = [1, 1, 1]} : vector<4x8x32xf32> to vector<1x8x32xf32>
    %33 = vector.shape_cast %32 : vector<1x8x32xf32> to vector<8x32xf32>
    %cst_15 = arith.constant dense<0.000000e+00> : vector<8x32xf32>
    %34 = tpu.matmul %31, %33, %cst_15 {dimension_numbers = #tpu.dot_dimension_numbers<[1], [0], [0], [1], [0, 0, 1, 1], [], []>} : vector<8x8xf32>, vector<8x32xf32>, vector<8x32xf32> -> vector<8x32xf32>
    %35 = arith.addf %11, %34 : vector<8x32xf32>
    %36 = vector.extract_strided_slice %4 {offsets = [0, 8], sizes = [8, 8], strides = [1, 1]} : vector<16x384xf32> to vector<8x8xf32>
    %37 = arith.truncf %36 : vector<8x8xf32> to vector<8x8xbf16>
    %38 = vector.extract_strided_slice %4 {offsets = [0, 136], sizes = [8, 8], strides = [1, 1]} : vector<16x384xf32> to vector<8x8xf32>
    %39 = arith.truncf %38 : vector<8x8xf32> to vector<8x8xbf16>
    %40 = vector.extract_strided_slice %4 {offsets = [0, 264], sizes = [8, 8], strides = [1, 1]} : vector<16x384xf32> to vector<8x8xf32>
    %41 = arith.truncf %40 : vector<8x8xf32> to vector<8x8xbf16>
    %cst_16 = arith.constant dense<0.000000e+00> : vector<8x8xf32>
    %42 = tpu.matmul %37, %39, %cst_16 {dimension_numbers = #tpu.dot_dimension_numbers<[1], [1], [0], [0], [0, 0, 1, 0], [], []>} : vector<8x8xbf16>, vector<8x8xbf16>, vector<8x8xf32> -> vector<8x8xf32>
    %43 = arith.addf %42, %10 : vector<8x8xf32>
    %cst_17 = arith.constant dense<0xFF800000> : vector<8xf32>
    %44 = vector.multi_reduction <maximumf>, %43, %cst_17 [1] : vector<8x8xf32> to vector<8xf32>
    %45 = vector.shape_cast %44 : vector<8xf32> to vector<8x1xf32>
    %46 = vector.broadcast %45 : vector<8x1xf32> to vector<8x8xf32>
    %47 = arith.subf %43, %46 : vector<8x8xf32>
    %48 = math.exp %47 : vector<8x8xf32>
    %cst_18 = arith.constant dense<0.000000e+00> : vector<8xf32>
    %49 = vector.multi_reduction <add>, %48, %cst_18 [1] : vector<8x8xf32> to vector<8xf32>
    %50 = vector.shape_cast %49 : vector<8xf32> to vector<8x1xf32>
    %51 = tpu.reciprocal %50 {approx = true} : vector<8x1xf32> -> vector<8x1xf32>
    %52 = vector.broadcast %51 : vector<8x1xf32> to vector<8x8xf32>
    %53 = arith.mulf %48, %52 : vector<8x8xf32>
    %54 = arith.truncf %53 : vector<8x8xf32> to vector<8x8xbf16>
    %cst_19 = arith.constant dense<0.000000e+00> : vector<8x8xf32>
    %55 = tpu.matmul %54, %41, %cst_19 {dimension_numbers = #tpu.dot_dimension_numbers<[1], [0], [0], [1], [0, 0, 1, 1], [], []>} : vector<8x8xbf16>, vector<8x8xbf16>, vector<8x8xf32> -> vector<8x8xf32>
    %56 = vector.extract_strided_slice %2 {offsets = [1, 0, 0], sizes = [1, 8, 32], strides = [1, 1, 1]} : vector<4x8x32xf32> to vector<1x8x32xf32>
    %57 = vector.shape_cast %56 : vector<1x8x32xf32> to vector<8x32xf32>
    %cst_20 = arith.constant dense<0.000000e+00> : vector<8x32xf32>
    %58 = tpu.matmul %55, %57, %cst_20 {dimension_numbers = #tpu.dot_dimension_numbers<[1], [0], [0], [1], [0, 0, 1, 1], [], []>} : vector<8x8xf32>, vector<8x32xf32>, vector<8x32xf32> -> vector<8x32xf32>
    %59 = arith.addf %35, %58 : vector<8x32xf32>
    %60 = vector.extract_strided_slice %4 {offsets = [0, 16], sizes = [8, 8], strides = [1, 1]} : vector<16x384xf32> to vector<8x8xf32>
    %61 = arith.truncf %60 : vector<8x8xf32> to vector<8x8xbf16>
    %62 = vector.extract_strided_slice %4 {offsets = [0, 144], sizes = [8, 8], strides = [1, 1]} : vector<16x384xf32> to vector<8x8xf32>
    %63 = arith.truncf %62 : vector<8x8xf32> to vector<8x8xbf16>
    %64 = vector.extract_strided_slice %4 {offsets = [0, 272], sizes = [8, 8], strides = [1, 1]} : vector<16x384xf32> to vector<8x8xf32>
    %65 = arith.truncf %64 : vector<8x8xf32> to vector<8x8xbf16>
    %cst_21 = arith.constant dense<0.000000e+00> : vector<8x8xf32>
    %66 = tpu.matmul %61, %63, %cst_21 {dimension_numbers = #tpu.dot_dimension_numbers<[1], [1], [0], [0], [0, 0, 1, 0], [], []>} : vector<8x8xbf16>, vector<8x8xbf16>, vector<8x8xf32> -> vector<8x8xf32>
    %67 = arith.addf %66, %10 : vector<8x8xf32>
    %cst_22 = arith.constant dense<0xFF800000> : vector<8xf32>
    %68 = vector.multi_reduction <maximumf>, %67, %cst_22 [1] : vector<8x8xf32> to vector<8xf32>
    %69 = vector.shape_cast %68 : vector<8xf32> to vector<8x1xf32>
    %70 = vector.broadcast %69 : vector<8x1xf32> to vector<8x8xf32>
    %71 = arith.subf %67, %70 : vector<8x8xf32>
    %72 = math.exp %71 : vector<8x8xf32>
    %cst_23 = arith.constant dense<0.000000e+00> : vector<8xf32>
    %73 = vector.multi_reduction <add>, %72, %cst_23 [1] : vector<8x8xf32> to vector<8xf32>
    %74 = vector.shape_cast %73 : vector<8xf32> to vector<8x1xf32>
    %75 = tpu.reciprocal %74 {approx = true} : vector<8x1xf32> -> vector<8x1xf32>
    %76 = vector.broadcast %75 : vector<8x1xf32> to vector<8x8xf32>
    %77 = arith.mulf %72, %76 : vector<8x8xf32>
    %78 = arith.truncf %77 : vector<8x8xf32> to vector<8x8xbf16>
    %cst_24 = arith.constant dense<0.000000e+00> : vector<8x8xf32>
    %79 = tpu.matmul %78, %65, %cst_24 {dimension_numbers = #tpu.dot_dimension_numbers<[1], [0], [0], [1], [0, 0, 1, 1], [], []>} : vector<8x8xbf16>, vector<8x8xbf16>, vector<8x8xf32> -> vector<8x8xf32>
    %80 = vector.extract_strided_slice %2 {offsets = [2, 0, 0], sizes = [1, 8, 32], strides = [1, 1, 1]} : vector<4x8x32xf32> to vector<1x8x32xf32>
    %81 = vector.shape_cast %80 : vector<1x8x32xf32> to vector<8x32xf32>
    %cst_25 = arith.constant dense<0.000000e+00> : vector<8x32xf32>
    %82 = tpu.matmul %79, %81, %cst_25 {dimension_numbers = #tpu.dot_dimension_numbers<[1], [0], [0], [1], [0, 0, 1, 1], [], []>} : vector<8x8xf32>, vector<8x32xf32>, vector<8x32xf32> -> vector<8x32xf32>
    %83 = arith.addf %59, %82 : vector<8x32xf32>
    %84 = vector.extract_strided_slice %4 {offsets = [0, 24], sizes = [8, 8], strides = [1, 1]} : vector<16x384xf32> to vector<8x8xf32>
    %85 = arith.truncf %84 : vector<8x8xf32> to vector<8x8xbf16>
    %86 = vector.extract_strided_slice %4 {offsets = [0, 152], sizes = [8, 8], strides = [1, 1]} : vector<16x384xf32> to vector<8x8xf32>
    %87 = arith.truncf %86 : vector<8x8xf32> to vector<8x8xbf16>
    %88 = vector.extract_strided_slice %4 {offsets = [0, 280], sizes = [8, 8], strides = [1, 1]} : vector<16x384xf32> to vector<8x8xf32>
    %89 = arith.truncf %88 : vector<8x8xf32> to vector<8x8xbf16>
    %cst_26 = arith.constant dense<0.000000e+00> : vector<8x8xf32>
    %90 = tpu.matmul %85, %87, %cst_26 {dimension_numbers = #tpu.dot_dimension_numbers<[1], [1], [0], [0], [0, 0, 1, 0], [], []>} : vector<8x8xbf16>, vector<8x8xbf16>, vector<8x8xf32> -> vector<8x8xf32>
    %91 = arith.addf %90, %10 : vector<8x8xf32>
    %cst_27 = arith.constant dense<0xFF800000> : vector<8xf32>
    %92 = vector.multi_reduction <maximumf>, %91, %cst_27 [1] : vector<8x8xf32> to vector<8xf32>
    %93 = vector.shape_cast %92 : vector<8xf32> to vector<8x1xf32>
    %94 = vector.broadcast %93 : vector<8x1xf32> to vector<8x8xf32>
    %95 = arith.subf %91, %94 : vector<8x8xf32>
    %96 = math.exp %95 : vector<8x8xf32>
    %cst_28 = arith.constant dense<0.000000e+00> : vector<8xf32>
    %97 = vector.multi_reduction <add>, %96, %cst_28 [1] : vector<8x8xf32> to vector<8xf32>
    %98 = vector.shape_cast %97 : vector<8xf32> to vector<8x1xf32>
    %99 = tpu.reciprocal %98 {approx = true} : vector<8x1xf32> -> vector<8x1xf32>
    %100 = vector.broadcast %99 : vector<8x1xf32> to vector<8x8xf32>
    %101 = arith.mulf %96, %100 : vector<8x8xf32>
    %102 = arith.truncf %101 : vector<8x8xf32> to vector<8x8xbf16>
    %cst_29 = arith.constant dense<0.000000e+00> : vector<8x8xf32>
    %103 = tpu.matmul %102, %89, %cst_29 {dimension_numbers = #tpu.dot_dimension_numbers<[1], [0], [0], [1], [0, 0, 1, 1], [], []>} : vector<8x8xbf16>, vector<8x8xbf16>, vector<8x8xf32> -> vector<8x8xf32>
    %104 = vector.extract_strided_slice %2 {offsets = [3, 0, 0], sizes = [1, 8, 32], strides = [1, 1, 1]} : vector<4x8x32xf32> to vector<1x8x32xf32>
    %105 = vector.shape_cast %104 : vector<1x8x32xf32> to vector<8x32xf32>
    %cst_30 = arith.constant dense<0.000000e+00> : vector<8x32xf32>
    %106 = tpu.matmul %103, %105, %cst_30 {dimension_numbers = #tpu.dot_dimension_numbers<[1], [0], [0], [1], [0, 0, 1, 1], [], []>} : vector<8x8xf32>, vector<8x32xf32>, vector<8x32xf32> -> vector<8x32xf32>
    %107 = arith.addf %83, %106 : vector<8x32xf32>
    %108 = vector.broadcast %3 : vector<1x32xf32> to vector<8x32xf32>
    %109 = arith.addf %107, %108 : vector<8x32xf32>
    %c0_31 = arith.constant 0 : index
    %c0_32 = arith.constant 0 : index
    %110 = vector.load %arg5[%c0_31, %c0_32] : memref<16x32xf32, #tpu.memory_space<vmem>>, vector<8x32xf32>
    tpu.vector_store %arg5[%c0_31, %c0_32], %109 {strides = array<i32>} : memref<16x32xf32, #tpu.memory_space<vmem>>, vector<8x32xf32>,
    %cst_33 = arith.constant 0.000000e+00 : f32
    %111 = vector.broadcast %cst_33 : f32 to vector<8x32xf32>
    %112 = vector.extract_strided_slice %4 {offsets = [8, 0], sizes = [8, 8], strides = [1, 1]} : vector<16x384xf32> to vector<8x8xf32>
    %113 = arith.truncf %112 : vector<8x8xf32> to vector<8x8xbf16>
    %114 = vector.extract_strided_slice %4 {offsets = [8, 128], sizes = [8, 8], strides = [1, 1]} : vector<16x384xf32> to vector<8x8xf32>
    %115 = arith.truncf %114 : vector<8x8xf32> to vector<8x8xbf16>
    %116 = vector.extract_strided_slice %4 {offsets = [8, 256], sizes = [8, 8], strides = [1, 1]} : vector<16x384xf32> to vector<8x8xf32>
    %117 = arith.truncf %116 : vector<8x8xf32> to vector<8x8xbf16>
    %cst_34 = arith.constant dense<0.000000e+00> : vector<8x8xf32>
    %118 = tpu.matmul %113, %115, %cst_34 {dimension_numbers = #tpu.dot_dimension_numbers<[1], [1], [0], [0], [0, 0, 1, 0], [], []>} : vector<8x8xbf16>, vector<8x8xbf16>, vector<8x8xf32> -> vector<8x8xf32>
    %119 = arith.addf %118, %10 : vector<8x8xf32>
    %cst_35 = arith.constant dense<0xFF800000> : vector<8xf32>
    %120 = vector.multi_reduction <maximumf>, %119, %cst_35 [1] : vector<8x8xf32> to vector<8xf32>
    %121 = vector.shape_cast %120 : vector<8xf32> to vector<8x1xf32>
    %122 = vector.broadcast %121 : vector<8x1xf32> to vector<8x8xf32>
    %123 = arith.subf %119, %122 : vector<8x8xf32>
    %124 = math.exp %123 : vector<8x8xf32>
    %cst_36 = arith.constant dense<0.000000e+00> : vector<8xf32>
    %125 = vector.multi_reduction <add>, %124, %cst_36 [1] : vector<8x8xf32> to vector<8xf32>
    %126 = vector.shape_cast %125 : vector<8xf32> to vector<8x1xf32>
    %127 = tpu.reciprocal %126 {approx = true} : vector<8x1xf32> -> vector<8x1xf32>
    %128 = vector.broadcast %127 : vector<8x1xf32> to vector<8x8xf32>
    %129 = arith.mulf %124, %128 : vector<8x8xf32>
    %130 = arith.truncf %129 : vector<8x8xf32> to vector<8x8xbf16>
    %cst_37 = arith.constant dense<0.000000e+00> : vector<8x8xf32>
    %131 = tpu.matmul %130, %117, %cst_37 {dimension_numbers = #tpu.dot_dimension_numbers<[1], [0], [0], [1], [0, 0, 1, 1], [], []>} : vector<8x8xbf16>, vector<8x8xbf16>, vector<8x8xf32> -> vector<8x8xf32>
    %132 = vector.extract_strided_slice %2 {offsets = [0, 0, 0], sizes = [1, 8, 32], strides = [1, 1, 1]} : vector<4x8x32xf32> to vector<1x8x32xf32>
    %133 = vector.shape_cast %132 : vector<1x8x32xf32> to vector<8x32xf32>
    %cst_38 = arith.constant dense<0.000000e+00> : vector<8x32xf32>
    %134 = tpu.matmul %131, %133, %cst_38 {dimension_numbers = #tpu.dot_dimension_numbers<[1], [0], [0], [1], [0, 0, 1, 1], [], []>} : vector<8x8xf32>, vector<8x32xf32>, vector<8x32xf32> -> vector<8x32xf32>
    %135 = arith.addf %111, %134 : vector<8x32xf32>
    %136 = vector.extract_strided_slice %4 {offsets = [8, 8], sizes = [8, 8], strides = [1, 1]} : vector<16x384xf32> to vector<8x8xf32>
    %137 = arith.truncf %136 : vector<8x8xf32> to vector<8x8xbf16>
    %138 = vector.extract_strided_slice %4 {offsets = [8, 136], sizes = [8, 8], strides = [1, 1]} : vector<16x384xf32> to vector<8x8xf32>
    %139 = arith.truncf %138 : vector<8x8xf32> to vector<8x8xbf16>
    %140 = vector.extract_strided_slice %4 {offsets = [8, 264], sizes = [8, 8], strides = [1, 1]} : vector<16x384xf32> to vector<8x8xf32>
    %141 = arith.truncf %140 : vector<8x8xf32> to vector<8x8xbf16>
    %cst_39 = arith.constant dense<0.000000e+00> : vector<8x8xf32>
    %142 = tpu.matmul %137, %139, %cst_39 {dimension_numbers = #tpu.dot_dimension_numbers<[1], [1], [0], [0], [0, 0, 1, 0], [], []>} : vector<8x8xbf16>, vector<8x8xbf16>, vector<8x8xf32> -> vector<8x8xf32>
    %143 = arith.addf %142, %10 : vector<8x8xf32>
    %cst_40 = arith.constant dense<0xFF800000> : vector<8xf32>
    %144 = vector.multi_reduction <maximumf>, %143, %cst_40 [1] : vector<8x8xf32> to vector<8xf32>
    %145 = vector.shape_cast %144 : vector<8xf32> to vector<8x1xf32>
    %146 = vector.broadcast %145 : vector<8x1xf32> to vector<8x8xf32>
    %147 = arith.subf %143, %146 : vector<8x8xf32>
    %148 = math.exp %147 : vector<8x8xf32>
    %cst_41 = arith.constant dense<0.000000e+00> : vector<8xf32>
    %149 = vector.multi_reduction <add>, %148, %cst_41 [1] : vector<8x8xf32> to vector<8xf32>
    %150 = vector.shape_cast %149 : vector<8xf32> to vector<8x1xf32>
    %151 = tpu.reciprocal %150 {approx = true} : vector<8x1xf32> -> vector<8x1xf32>
    %152 = vector.broadcast %151 : vector<8x1xf32> to vector<8x8xf32>
    %153 = arith.mulf %148, %152 : vector<8x8xf32>
    %154 = arith.truncf %153 : vector<8x8xf32> to vector<8x8xbf16>
    %cst_42 = arith.constant dense<0.000000e+00> : vector<8x8xf32>
    %155 = tpu.matmul %154, %141, %cst_42 {dimension_numbers = #tpu.dot_dimension_numbers<[1], [0], [0], [1], [0, 0, 1, 1], [], []>} : vector<8x8xbf16>, vector<8x8xbf16>, vector<8x8xf32> -> vector<8x8xf32>
    %156 = vector.extract_strided_slice %2 {offsets = [1, 0, 0], sizes = [1, 8, 32], strides = [1, 1, 1]} : vector<4x8x32xf32> to vector<1x8x32xf32>
    %157 = vector.shape_cast %156 : vector<1x8x32xf32> to vector<8x32xf32>
    %cst_43 = arith.constant dense<0.000000e+00> : vector<8x32xf32>
    %158 = tpu.matmul %155, %157, %cst_43 {dimension_numbers = #tpu.dot_dimension_numbers<[1], [0], [0], [1], [0, 0, 1, 1], [], []>} : vector<8x8xf32>, vector<8x32xf32>, vector<8x32xf32> -> vector<8x32xf32>
    %159 = arith.addf %135, %158 : vector<8x32xf32>
    %160 = vector.extract_strided_slice %4 {offsets = [8, 16], sizes = [8, 8], strides = [1, 1]} : vector<16x384xf32> to vector<8x8xf32>
    %161 = arith.truncf %160 : vector<8x8xf32> to vector<8x8xbf16>
    %162 = vector.extract_strided_slice %4 {offsets = [8, 144], sizes = [8, 8], strides = [1, 1]} : vector<16x384xf32> to vector<8x8xf32>
    %163 = arith.truncf %162 : vector<8x8xf32> to vector<8x8xbf16>
    %164 = vector.extract_strided_slice %4 {offsets = [8, 272], sizes = [8, 8], strides = [1, 1]} : vector<16x384xf32> to vector<8x8xf32>
    %165 = arith.truncf %164 : vector<8x8xf32> to vector<8x8xbf16>
    %cst_44 = arith.constant dense<0.000000e+00> : vector<8x8xf32>
    %166 = tpu.matmul %161, %163, %cst_44 {dimension_numbers = #tpu.dot_dimension_numbers<[1], [1], [0], [0], [0, 0, 1, 0], [], []>} : vector<8x8xbf16>, vector<8x8xbf16>, vector<8x8xf32> -> vector<8x8xf32>
    %167 = arith.addf %166, %10 : vector<8x8xf32>
    %cst_45 = arith.constant dense<0xFF800000> : vector<8xf32>
    %168 = vector.multi_reduction <maximumf>, %167, %cst_45 [1] : vector<8x8xf32> to vector<8xf32>
    %169 = vector.shape_cast %168 : vector<8xf32> to vector<8x1xf32>
    %170 = vector.broadcast %169 : vector<8x1xf32> to vector<8x8xf32>
    %171 = arith.subf %167, %170 : vector<8x8xf32>
    %172 = math.exp %171 : vector<8x8xf32>
    %cst_46 = arith.constant dense<0.000000e+00> : vector<8xf32>
    %173 = vector.multi_reduction <add>, %172, %cst_46 [1] : vector<8x8xf32> to vector<8xf32>
    %174 = vector.shape_cast %173 : vector<8xf32> to vector<8x1xf32>
    %175 = tpu.reciprocal %174 {approx = true} : vector<8x1xf32> -> vector<8x1xf32>
    %176 = vector.broadcast %175 : vector<8x1xf32> to vector<8x8xf32>
    %177 = arith.mulf %172, %176 : vector<8x8xf32>
    %178 = arith.truncf %177 : vector<8x8xf32> to vector<8x8xbf16>
    %cst_47 = arith.constant dense<0.000000e+00> : vector<8x8xf32>
    %179 = tpu.matmul %178, %165, %cst_47 {dimension_numbers = #tpu.dot_dimension_numbers<[1], [0], [0], [1], [0, 0, 1, 1], [], []>} : vector<8x8xbf16>, vector<8x8xbf16>, vector<8x8xf32> -> vector<8x8xf32>
    %180 = vector.extract_strided_slice %2 {offsets = [2, 0, 0], sizes = [1, 8, 32], strides = [1, 1, 1]} : vector<4x8x32xf32> to vector<1x8x32xf32>
    %181 = vector.shape_cast %180 : vector<1x8x32xf32> to vector<8x32xf32>
    %cst_48 = arith.constant dense<0.000000e+00> : vector<8x32xf32>
    %182 = tpu.matmul %179, %181, %cst_48 {dimension_numbers = #tpu.dot_dimension_numbers<[1], [0], [0], [1], [0, 0, 1, 1], [], []>} : vector<8x8xf32>, vector<8x32xf32>, vector<8x32xf32> -> vector<8x32xf32>
    %183 = arith.addf %159, %182 : vector<8x32xf32>
    %184 = vector.extract_strided_slice %4 {offsets = [8, 24], sizes = [8, 8], strides = [1, 1]} : vector<16x384xf32> to vector<8x8xf32>
    %185 = arith.truncf %184 : vector<8x8xf32> to vector<8x8xbf16>
    %186 = vector.extract_strided_slice %4 {offsets = [8, 152], sizes = [8, 8], strides = [1, 1]} : vector<16x384xf32> to vector<8x8xf32>
    %187 = arith.truncf %186 : vector<8x8xf32> to vector<8x8xbf16>
    %188 = vector.extract_strided_slice %4 {offsets = [8, 280], sizes = [8, 8], strides = [1, 1]} : vector<16x384xf32> to vector<8x8xf32>
    %189 = arith.truncf %188 : vector<8x8xf32> to vector<8x8xbf16>
    %cst_49 = arith.constant dense<0.000000e+00> : vector<8x8xf32>
    %190 = tpu.matmul %185, %187, %cst_49 {dimension_numbers = #tpu.dot_dimension_numbers<[1], [1], [0], [0], [0, 0, 1, 0], [], []>} : vector<8x8xbf16>, vector<8x8xbf16>, vector<8x8xf32> -> vector<8x8xf32>
    %191 = arith.addf %190, %10 : vector<8x8xf32>
    %cst_50 = arith.constant dense<0xFF800000> : vector<8xf32>
    %192 = vector.multi_reduction <maximumf>, %191, %cst_50 [1] : vector<8x8xf32> to vector<8xf32>
    %193 = vector.shape_cast %192 : vector<8xf32> to vector<8x1xf32>
    %194 = vector.broadcast %193 : vector<8x1xf32> to vector<8x8xf32>
    %195 = arith.subf %191, %194 : vector<8x8xf32>
    %196 = math.exp %195 : vector<8x8xf32>
    %cst_51 = arith.constant dense<0.000000e+00> : vector<8xf32>
    %197 = vector.multi_reduction <add>, %196, %cst_51 [1] : vector<8x8xf32> to vector<8xf32>
    %198 = vector.shape_cast %197 : vector<8xf32> to vector<8x1xf32>
    %199 = tpu.reciprocal %198 {approx = true} : vector<8x1xf32> -> vector<8x1xf32>
    %200 = vector.broadcast %199 : vector<8x1xf32> to vector<8x8xf32>
    %201 = arith.mulf %196, %200 : vector<8x8xf32>
    %202 = arith.truncf %201 : vector<8x8xf32> to vector<8x8xbf16>
    %cst_52 = arith.constant dense<0.000000e+00> : vector<8x8xf32>
    %203 = tpu.matmul %202, %189, %cst_52 {dimension_numbers = #tpu.dot_dimension_numbers<[1], [0], [0], [1], [0, 0, 1, 1], [], []>} : vector<8x8xbf16>, vector<8x8xbf16>, vector<8x8xf32> -> vector<8x8xf32>
    %204 = vector.extract_strided_slice %2 {offsets = [3, 0, 0], sizes = [1, 8, 32], strides = [1, 1, 1]} : vector<4x8x32xf32> to vector<1x8x32xf32>
    %205 = vector.shape_cast %204 : vector<1x8x32xf32> to vector<8x32xf32>
    %cst_53 = arith.constant dense<0.000000e+00> : vector<8x32xf32>
    %206 = tpu.matmul %203, %205, %cst_53 {dimension_numbers = #tpu.dot_dimension_numbers<[1], [0], [0], [1], [0, 0, 1, 1], [], []>} : vector<8x8xf32>, vector<8x32xf32>, vector<8x32xf32> -> vector<8x32xf32>
    %207 = arith.addf %183, %206 : vector<8x32xf32>
    %208 = vector.broadcast %3 : vector<1x32xf32> to vector<8x32xf32>
    %209 = arith.addf %207, %208 : vector<8x32xf32>
    %c8 = arith.constant 8 : index
    %c0_54 = arith.constant 0 : index
    %210 = vector.load %arg5[%c8, %c0_54] : memref<16x32xf32, #tpu.memory_space<vmem>>, vector<8x32xf32>
    tpu.vector_store %arg5[%c8, %c0_54], %209 {strides = array<i32>} : memref<16x32xf32, #tpu.memory_space<vmem>>, vector<8x32xf32>,
    return
  }
  func.func @transform_0(%arg0: i32) -> (i32, i32) {
    %c0_i32 = arith.constant 0 : i32
    %c0_i32_0 = arith.constant 0 : i32
    %c0_i32_1 = arith.constant 0 : i32
    return %c0_i32, %c0_i32_0 : i32, i32
  }
  func.func @transform_1(%arg0: i32) -> (i32, i32) {
    %c0_i32 = arith.constant 0 : i32
    %c0_i32_0 = arith.constant 0 : i32
    %c0_i32_1 = arith.constant 0 : i32
    return %c0_i32, %c0_i32_0 : i32, i32
  }
  func.func @transform_2(%arg0: i32) -> (i32, i32, i32) {
    %c0_i32 = arith.constant 0 : i32
    %c0_i32_0 = arith.constant 0 : i32
    %c0_i32_1 = arith.constant 0 : i32
    %c0_i32_2 = arith.constant 0 : i32
    return %c0_i32, %c0_i32_0, %c0_i32_1 : i32, i32, i32
  }
  func.func @transform_3(%arg0: i32) -> (i32, i32) {
    %c0_i32 = arith.constant 0 : i32
    %c0_i32_0 = arith.constant 0 : i32
    %c0_i32_1 = arith.constant 0 : i32
    return %c0_i32, %c0_i32_0 : i32, i32
  }
  func.func @transform_4(%arg0: i32) -> (i32, i32) {
    %c0_i32 = arith.constant 0 : i32
    %c0_i32_0 = arith.constant 0 : i32
    %c0_i32_1 = arith.constant 0 : i32
    return %c0_i32, %c0_i32_0 : i32, i32
  }
}

</mosaic_0001>

<bundles_post_ra>
// kernel: tpu_custom_call.1
= control target key start
LH: loop header
LB: loop body
LE: loop exit
PB: predicated region body
PF: predicated region fallthrough
CT: control target
= control target key end

     0   :  { %9 = vsyncpa [#allocation3], 0  ;;  %s2378_s0 = inlined_call_operand.hbm [shape: bf16[16,32], index: 0, kind: input, shape index: {}]   ;;  %s2379_s1 = inlined_call_operand.hbm [shape: bf16[32,384], index: 1, kind: input, shape index: {}]   ;;  %s2380_s2 = inlined_call_operand.hbm [shape: f32[4,8,32], index: 2, kind: input, shape index: {}]   ;;  %s2381_s3 = inlined_call_operand.vmem [shape: f32[1,32], index: 3, kind: input, shape index: {}]   ;;  %s2382_s4 = inlined_call_operand.hbm [shape: f32[16,32], index: 4, kind: output, shape index: {}]  }
   0x1   :  { %10 = vsyncpa [#allocation6], 0 }
   0x2   :  { %11 = vsyncpa [#allocation4], 0  ;;  %s2077_s15 = smov [#allocation5]  }
   0x3   :  { %s29_s16 = sshll.u32 %s2077_s15, 4  ;;  %s30_s16 = int_to_ptr.vmem [resolvable:$true] %s29_s16 }
   0x4   :  { %s1999_s17 = scalar_lea.vmem %s30_s16, 768  ;;  %p2004_p1 = scmp.lt.s32.totalorder %s30_s16, %s30_s16 }
   0x5   :  { %p2000_p0 = scmp.ne.s32.totalorder %s30_s16, %s1999_s17  ;;  %p2005_p2 = scmp.lt.s32.totalorder %s1999_s17, %s1999_s17 }
   0x7   :  { %p2006_p3 = por %p2005_p2, %p2004_p1 }
   0x9   :  { %p2007_p4 = pnand %p2006_p3, %p2000_p0 }
   0xb   :  { %2010 = shalt.err (!%p2007_p4)
}
   0xc   :  { %s2078_s18 = smov 192   ;;  %s2079_s19 = smov 12  }
   0xd   :  { %35 = dma.hbm_to_vmem [thread:$0]  %s2379_s1, 768, %s30_s16, [#allocation6], %s2078_s18, %s2078_s18, %s2079_s19  }
   0xe   :  { %s2080_s22 = smov [#allocation2]  }
   0xf   :  { %s17_s23 = sshll.u32 %s2080_s22, 4  ;;  %s18_s23 = int_to_ptr.vmem [resolvable:$true] %s17_s23 }
  0x10   :  { %s2019_s24 = scalar_lea.vmem %s18_s23, 128  ;;  %p2024_p6 = scmp.lt.s32.totalorder %s18_s23, %s18_s23 }
  0x11   :  { %p2020_p5 = scmp.ne.s32.totalorder %s18_s23, %s2019_s24  ;;  %p2025_p7 = scmp.lt.s32.totalorder %s2019_s24, %s2019_s24 }
  0x13   :  { %p2026_p8 = por %p2025_p7, %p2024_p6 }
  0x15   :  { %p2027_p9 = pnand %p2026_p8, %p2020_p5 }
  0x17   :  { %2030 = shalt.err (!%p2027_p9)
}
  0x18   :  { %s2081_s25 = smov 64   ;;  %s2082_s26 = smov 4  }
  0x19   :  { %23 = dma.hbm_to_vmem [thread:$0]  %s2378_s0, 128, %s18_s23, [#allocation3], %s2081_s25, %s2081_s25, %s2082_s26  }
  0x1a   :  { %s2083_s29 = smov [#allocation7]  }
  0x1b   :  { %s41_s30 = sshll.u32 %s2083_s29, 4  ;;  %s42_s30 = int_to_ptr.vmem [resolvable:$true] %s41_s30 }
  0x1c   :  { %s2039_s1 = scalar_lea.vmem %s42_s30, 512  ;;  %p2044_p11 = scmp.lt.s32.totalorder %s42_s30, %s42_s30 }
  0x1d   :  { %p2040_p10 = scmp.ne.s32.totalorder %s42_s30, %s2039_s1  ;;  %p2045_p12 = scmp.lt.s32.totalorder %s2039_s1, %s2039_s1 }
  0x1f   :  { %p2046_p13 = por %p2045_p12, %p2044_p11 }
  0x21   :  { %p2047_p0 = pnand %p2046_p13, %p2040_p10 }
  0x23   :  { %2050 = shalt.err (!%p2047_p0)
}
  0x24   :  { %s2084_s5 = smov 128   ;;  %s2085_s6 = smov 8  }
  0x25   :  { %47 = dma.hbm_to_vmem [thread:$0]  %s2380_s2, 512, %s42_s30, [#allocation6], %s2084_s5, %s2084_s5, %s2085_s6  }
  0x26   :  { %2071 = dma.done.wait [#allocation3], 128  }
  0x27   :  { %2072 = vsyncadd [#allocation3], 4294967168 }
  0x28   :  { %2073 = dma.done.wait [#allocation6], 1280  }
  0x29   :  { %2074 = vsyncadd [#allocation6], 4294966016  ;;  %v2086_v0 = vmov 0   ;;  %v1950_v1 = vld [vmem:[#allocation5 + $0x1c] ss:$12 sps:$4 sm:$0xff]   ;;  %vm112_vm0 = vcmask 261120   ;;  %v200_v17 = vlaneseq }
  0x2a   :  { %148 = vmatprep.mubr.bf16.mxu0 %v2086_v0  ;;  %v1952_v2 = vld [vmem:[#allocation5 + $0x18] ss:$12 sps:$4 sm:$0xff]   ;;  %128 = vmatprep.subr.bf16.mxu0 %v1950_v1  ;;  %v1955_v4 = vld [vmem:[#allocation5] ss:$12 sps:$4 sm:$0xff]   ;;  %v2087_v6 = vmov 0.0   ;;  %vm2088_vm1 = vmmov 0  }
  0x2b   :  { %v1953_v3 = vld [vmem:[#allocation5 + $0x4] ss:$12 sps:$4 sm:$0xff]   ;;  %129 = vmatpush1.bf16.msra.mxu0 %v1952_v2  ;;  %v1956_v5 = vld [vmem:[#allocation2] sm:$0xff]   ;;  %1789 = vmatprep.subr.bf16.mxu1 %v2087_v6  ;;  %vm209_vm2 = vcmask 64512   ;;  %s2089_s0 = smov 120   ;;  %v201_v18 = vshrl.u32 %v200_v17, 7 }
  0x2c   :  { %130 = vmatprep.subr.bf16.mxu0 %v1953_v3  ;;  %1793 = vmatprep.mubr.msk.bf16.mxu1 %vm2088_vm1, %v2087_v6  ;;  %v1957_v12 = vld [vmem:[#allocation5 + $0x20] ss:$12 sps:$4 sm:$0xff]   ;;  %v1958_v13 = vld [vmem:[#allocation5 + $0x8] ss:$12 sps:$4 sm:$0xff]   ;;  %v203_v19 = vand.u32 127, %v200_v17  ;;  %v2090_v22 = vmov -inf  }
  0x2d   :  { %1790 = vmatpush3.bf16.msra.mxu1 %v1957_v12  ;;  %vm271_vm4 = vcmask 1043456   ;;  %s2091_s2 = smov 104   ;;  %s2092_s9 = smov 112   ;;  %v2195_v56 = vld [vmem:[#allocation7 + $0x8] sm:$0xff]  ;;  %v2201_v63 = vld [vmem:[#allocation7] sm:$0xff] }
  0x2e   :  { %1791 = vmatprep.subr.bf16.mxu1 %v2087_v6  ;;  %vm204_vm3 = vcmp.ge.s32.totalorder %v201_v18, %v203_v19 }
  0x2f   :  { %131 = vmatpush1.bf16.msra.mxu0 %v1955_v4  ;;  %v2167_v23 = vsel %vm204_vm3, 0.0, %v2090_v22 }
  0x30   :  { %1797 = vmatprep.subr.bf16.mxu0 %v2087_v6 }
  0x31   :  { %1792 = vmatpush3.bf16.msra.mxu1 %v1958_v13 }
  0x32   :  { %1711 = vmatmul.mubr.msk.bf16.vlgmr.msra.gmra.mxu0 %vm112_vm0, %v1956_v5  ;;  %1803 = vmatprep.subr.bf16.mxu1 %v2087_v6 }
  0x33   :  { %1799 = vmatprep.mubr.msk.bf16.mxu0 %vm2088_vm1, %v2087_v6 }
  0x34   :  { %1794 = vmatmul.mubr.msk.bf16.vlgmr.msra.gmra.mxu1 %vm112_vm0, %v1956_v5 }
  0x35   :  { %1805 = vmatprep.mubr.msk.bf16.mxu1 %vm2088_vm1, %v2087_v6 }
  0xf2   :  { %v150_v7 = vpop.f32.mrf.mxu0 }
  0xf3   :  { %v2144_v11 = vpack.c.bf16 %v150_v7, %v150_v7 }
  0xf4   :  { %v152_v8 = vpop.f32.mrf.mxu0  ;;  %v193_v39 = vpop.f32.mrf.mxu1 }
  0xf5   :  { %v2138_v9 = vpack.c.bf16 %v152_v8, %v152_v8  ;;  %v2176_v44 = vpack.c.bf16 %v193_v39, %v193_v39 }
  0xf6   :  { %v2163_v20 = vpop.f32.mrf.mxu0  ;;  %v1795_v40 = vpop.f32.mrf.mxu1 }
  0xf7   :  { %319 = vrot.lane.b32.xlu0 %v2138_v9, %s2089_s0  ;;  %v214_v10 = vsel %vm209_vm2, %v2138_v9, 0  ;;  %v273_v46 = vsel %vm271_vm4, %v2176_v44, 0 }
  0xf8   :  { %1798 = vmatpush3.bf16.xpose.msra.mxu0 %v214_v10  ;;  %v2165_v21 = vpop.f32.mrf.mxu0  ;;  %v2174_v43 = vpop.f32.mrf.mxu1  ;;  %1804 = vmatpush3.bf16.msra.mxu1 %v273_v46 }
  0xf9   :  { %1809 = vmatprep.subr.bf16.mxu0 %v2087_v6  ;;  %1815 = vmatprep.subr.bf16.mxu1 %v2087_v6 }
  0xfa   :  { %v1796_v45 = vpop.f32.mrf.mxu1 }
  0xfb   :  { %316 = vrot.lane.b32.xlu0 %v2144_v11, %s2089_s0 }
  0xff   :  { %1800 = vmatmul.mubr.msk.bf16.vlgmr.msra.gmra.mxu0 %vm209_vm2, %v2144_v11 }
 0x100   :  { %1811 = vmatprep.mubr.msk.bf16.mxu0 %vm2088_vm1, %v2087_v6 }
 0x169   :  { %v320_v14 = vpop.permute.xlu0 %319 }
 0x16a   :  { %v325_v15 = vsel %vm209_vm2, %v320_v14, 0 }
 0x16b   :  { %1810 = vmatpush3.bf16.xpose.msra.mxu0 %v325_v15 }
 0x16c   :  { %1821 = vmatprep.subr.mxu0 %v2087_v6 }
 0x16d   :  { %v317_v16 = vpop.permute.xlu0 %316 }
 0x172   :  { %1812 = vmatmul.mubr.msk.bf16.vlgmr.msra.gmra.mxu0 %vm209_vm2, %v317_v16 }
 0x173   :  { %1823 = vmatprep.mubr.msk.f32.mxu0 %vm2088_vm1, %v2087_v6  ;;  %1822 = vmatpush3.msra.mxu0 %v2195_v56 }
 0x174   :  { %1831 = vmatprep.subr.bf16.mxu0 %v2087_v6 }
 0x1bf   :  { %v250_v24 = vpop.f32.mrf.mxu0 }
 0x1c0   :  { %v251_v25 = vadd.f32 %v250_v24, %v2167_v23 }
 0x1c1   :  { %v1801_v26 = vpop.f32.mrf.mxu0 }
 0x1c2   :  { %v256_v27 = vsel %vm209_vm2, %v251_v25, -inf }
 0x1c3   :  { %257 = vmax.xlane.f32.xlu1 %v256_v27  ;;  %v253_v28 = vpop.f32.mrf.mxu0 }
 0x1c5   :  { %v1802_v29 = vpop.f32.mrf.mxu0 }
 0x232   :  { %v361_v30 = vpop.f32.mrf.mxu0 }
 0x233   :  { %v362_v31 = vadd.f32 %v361_v30, %v2167_v23 }
 0x234   :  { %v1813_v32 = vpop.f32.mrf.mxu0 }
 0x235   :  { %v367_v33 = vsel %vm209_vm2, %v362_v31, -inf }
 0x236   :  { %368 = vmax.xlane.f32.xlu1 %v367_v33  ;;  %v364_v34 = vpop.f32.mrf.mxu0 }
 0x238   :  { %v1814_v35 = vpop.f32.mrf.mxu0 }
 0x24c   :  { %v258_v36 = vpop.xlane.xlu1 %257 }
 0x24d   :  { %v259_v37 = vsub.f32 %v251_v25, %v258_v36 }
 0x24f   :  { %v260_v38 = vmul.f32 1.442695, %v259_v37 }
 0x251   :  { %1959 = vpow2.f32 %v260_v38 }
 0x25e   :  { %v1960_v41 = vpop.eup %1959 }
 0x25f   :  { %v262_v42 = vsel %vm209_vm2, %v1960_v41, 0.0 }
 0x260   :  { %263 = vadd.xlane.f32.xlu0 %v262_v42  ;;  %v2247_v42 = vpack.c.bf16 %v2163_v20, %v2163_v20 }
 0x276   :  { %758 = vrot.lane.b32.xlu0 %v2144_v11, %s2091_s2 }
 0x2bf   :  { %v369_v47 = vpop.xlane.xlu1 %368 }
 0x2c0   :  { %v370_v48 = vsub.f32 %v362_v31, %v369_v47 }
 0x2c2   :  { %v371_v49 = vmul.f32 1.442695, %v370_v48 }
 0x2c4   :  { %1961 = vpow2.f32 %v371_v49 }
 0x2d1   :  { %v1962_v50 = vpop.eup %1961 }
 0x2d2   :  { %v373_v51 = vsel %vm209_vm2, %v1962_v50, 0.0 }
 0x2d3   :  { %374 = vadd.xlane.f32.xlu1 %v373_v51  ;;  %v2255_v51 = vld [vmem:[#allocation7 + $0x10] sm:$0xff] }
 0x2e4   :  { %380 = vrot.lane.b32.xlu1 %v2176_v44, %s2089_s0 }
 0x2e8   :  { %576 = vrot.lane.b32.xlu1 %v2138_v9, %s2092_s9 }
 0x2e9   :  { %v264_v52 = vpop.xlane.xlu0 %263 }
 0x2ea   :  { %1963 = vrcp.f32 %v264_v52 }
 0x2ec   :  { %574 = vrot.lane.b32.xlu1 %v2144_v11, %s2092_s9 }
 0x2ed   :  { %v759_v14 = vpop.permute.xlu0 %758 }
 0x2f0   :  { %760 = vrot.lane.b32.xlu1 %v2138_v9, %s2091_s2 }
 0x2f7   :  { %v1964_v53 = vpop.eup %1963 }
 0x2f8   :  { %v266_v54 = vmul.f32 %v1964_v53, %v1960_v41  ;;  %v2241_v41 = vpack.c.bf16 %v2165_v21, %v2165_v21 }
 0x2fa   :  { %v267_v55 = vpack.c.bf16 %v266_v54, %v266_v54 }
 0x2fc   :  { %1806 = vmatmul.mubr.msk.bf16.vlgmr.msra.gmra.mxu1 %vm209_vm2, %v267_v55 }
 0x2fd   :  { %1817 = vmatprep.mubr.msk.bf16.mxu1 %vm2088_vm1, %v2087_v6 }
 0x35c   :  { %v375_v57 = vpop.xlane.xlu1 %374 }
 0x35d   :  { %1965 = vrcp.f32 %v375_v57 }
 0x360   :  { %v381_v58 = vpop.permute.xlu1 %380 }
 0x361   :  { %v386_v59 = vsel %vm271_vm4, %v381_v58, 0 }
 0x362   :  { %1816 = vmatpush3.bf16.msra.mxu1 %v386_v59 }
 0x363   :  { %1826 = vmatprep.subr.mxu1 %v2087_v6 }
 0x364   :  { %v577_v4 = vpop.permute.xlu1 %576 }
 0x365   :  { %v582_v8 = vsel %vm209_vm2, %v577_v4, 0  ;;  %v2281_v4 = vld [vmem:[#allocation7 + $0x18] sm:$0xff] }
 0x368   :  { %v575_v5 = vpop.permute.xlu1 %574 }
 0x36a   :  { %v1966_v60 = vpop.eup %1965 }
 0x36b   :  { %v377_v61 = vmul.f32 %v1966_v60, %v1962_v50 }
 0x36c   :  { %v761_v11 = vpop.permute.xlu1 %760 }
 0x36d   :  { %v378_v62 = vpack.c.bf16 %v377_v61, %v377_v61  ;;  %v766_v13 = vsel %vm209_vm2, %v761_v11, 0 }
 0x36f   :  { %1818 = vmatmul.mubr.msk.bf16.vlgmr.msra.gmra.mxu1 %vm209_vm2, %v378_v62  ;;  %v957_v62 = vsel %vm209_vm2, %v2241_v41, 0 }
 0x370   :  { %1827 = vmatpush3.msra.mxu1 %v2201_v63  ;;  %1828 = vmatprep.mubr.msk.f32.mxu1 %vm2088_vm1, %v2087_v6 }
 0x371   :  { %1837 = vmatprep.subr.bf16.mxu1 %v2087_v6 }
 0x3bc   :  { %v309_v0 = vpop.f32.mrf.mxu1 }
 0x3bd   :  { %1829 = vmatmul.mubr.msk.f32.vlgmr.msra.gmra.mxu1 %vm209_vm2, %v309_v0 }
 0x3be   :  { %v1807_v1 = vpop.f32.mrf.mxu1  ;;  %1839 = vmatprep.mubr.msk.bf16.mxu1 %vm2088_vm1, %v2087_v6 }
 0x3c0   :  { %v312_v2 = vpop.f32.mrf.mxu1 }
 0x3c2   :  { %v1808_v3 = vpop.f32.mrf.mxu1 }
 0x42f   :  { %v422_v7 = vpop.f32.mrf.mxu1 }
 0x430   :  { %1824 = vmatmul.mubr.msk.f32.vlgmr.msra.gmra.mxu0 %vm209_vm2, %v422_v7 }
 0x431   :  { %1832 = vmatpush3.bf16.xpose.msra.mxu0 %v582_v8  ;;  %v1819_v9 = vpop.f32.mrf.mxu1  ;;  %1833 = vmatprep.mubr.msk.bf16.mxu0 %vm2088_vm1, %v2087_v6  ;;  %v2289_v8 = vpack.c.bf16 %v2174_v43, %v2174_v43 }
 0x432   :  { %1848 = vmatprep.subr.bf16.mxu0 %v2087_v6 }
 0x433   :  { %v425_v10 = vpop.f32.mrf.mxu1  ;;  %v1015_v11 = vsel %vm271_vm4, %v2289_v8, 0 }
 0x435   :  { %v1820_v12 = vpop.f32.mrf.mxu1 }
 0x438   :  { %1834 = vmatmul.mubr.msk.bf16.vlgmr.msra.gmra.mxu0 %vm209_vm2, %v575_v5 }
 0x439   :  { %1849 = vmatpush3.bf16.xpose.msra.mxu0 %v766_v13  ;;  %1850 = vmatprep.mubr.msk.bf16.mxu0 %vm2088_vm1, %v2087_v6 }
 0x43a   :  { %1860 = vmatprep.subr.mxu0 %v2087_v6 }
 0x440   :  { %1851 = vmatmul.mubr.msk.bf16.vlgmr.msra.gmra.mxu0 %vm209_vm2, %v759_v14 }
 0x441   :  { %1862 = vmatprep.mubr.msk.f32.mxu0 %vm2088_vm1, %v2087_v6  ;;  %1861 = vmatpush3.msra.mxu0 %v2281_v4 }
 0x442   :  { %1871 = vmatprep.subr.bf16.mxu0 %v2087_v6 }
 0x47d   :  { %v2224_v15 = vpop.f32.mrf.mxu1 }
 0x47f   :  { %v1830_v16 = vpop.f32.mrf.mxu1 }
 0x4f0   :  { %v2226_v17 = vpop.f32.mrf.mxu0 }
 0x4f1   :  { %v571_v5 = vadd.f32 %v2224_v15, %v2226_v17 }
 0x4f2   :  { %v1825_v18 = vpop.f32.mrf.mxu0 }
 0x4f8   :  { %v618_v19 = vpop.f32.mrf.mxu0 }
 0x4f9   :  { %v619_v22 = vadd.f32 %v618_v19, %v2167_v23 }
 0x4fa   :  { %v1835_v24 = vpop.f32.mrf.mxu0 }
 0x4fb   :  { %v624_v25 = vsel %vm209_vm2, %v619_v22, -inf }
 0x4fc   :  { %625 = vmax.xlane.f32.xlu1 %v624_v25  ;;  %v621_v26 = vpop.f32.mrf.mxu0 }
 0x4fe   :  { %v1836_v27 = vpop.f32.mrf.mxu0 }
 0x500   :  { %v802_v28 = vpop.f32.mrf.mxu0 }
 0x501   :  { %v803_v38 = vadd.f32 %v802_v28, %v2167_v23 }
 0x502   :  { %v1852_v29 = vpop.f32.mrf.mxu0 }
 0x503   :  { %v808_v40 = vsel %vm209_vm2, %v803_v38, -inf }
 0x504   :  { %v805_v30 = vpop.f32.mrf.mxu0 }
 0x506   :  { %v1853_v31 = vpop.f32.mrf.mxu0 }
 0x50d   :  { %636 = vrot.lane.b32.xlu1 %v2176_v44, %s2092_s9 }
 0x585   :  { %v626_v32 = vpop.xlane.xlu1 %625 }
 0x586   :  { %v627_v33 = vsub.f32 %v619_v22, %v626_v32 }
 0x588   :  { %v628_v34 = vmul.f32 1.442695, %v627_v33 }
 0x589   :  { %v637_v35 = vpop.permute.xlu1 %636 }
 0x58a   :  { %1967 = vpow2.f32 %v628_v34  ;;  %v642_v36 = vsel %vm271_vm4, %v637_v35, 0 }
 0x58b   :  { %1838 = vmatpush3.bf16.msra.mxu1 %v642_v36 }
 0x58c   :  { %1843 = vmatprep.subr.mxu1 %v2087_v6 }
 0x597   :  { %v1968_v37 = vpop.eup %1967 }
 0x598   :  { %v630_v39 = vsel %vm209_vm2, %v1968_v37, 0.0 }
 0x599   :  { %631 = vadd.xlane.f32.xlu0 %v630_v39  ;;  %v2308_v39 = vld [vmem:[%s2381_s3] ss:$0 sm:$0xff]  ;;  %s2093_s3 = smov [#allocation8]  }
 0x59a   :  { %s1691_s12 = sshll.u32 %s2093_s3, 4  ;;  %s1692_s12 = int_to_ptr.vmem [resolvable:$true] %s1691_s12 }
 0x59b   :  { %s2051_s13 = scalar_lea.vmem %s1692_s12, 256  ;;  %p2056_p2 = scmp.lt.s32.totalorder %s1692_s12, %s1692_s12 }
 0x59c   :  { %p2052_p1 = scmp.ne.s32.totalorder %s1692_s12, %s2051_s13  ;;  %p2057_p3 = scmp.lt.s32.totalorder %s2051_s13, %s2051_s13 }
 0x59d   :  { %809 = vmax.xlane.f32.xlu0 %v808_v40 }
 0x59e   :  { %p2058_p4 = por %p2057_p3, %p2056_p2 }
 0x5a0   :  { %p2059_p5 = pnand %p2058_p4, %p2052_p1 }
 0x5b3   :  { %820 = vrot.lane.b32.xlu0 %v2176_v44, %s2091_s2 }
 0x5b7   :  { %1061 = vrot.lane.b32.xlu0 %v2241_v41, %s2089_s0 }
 0x5bb   :  { %1058 = vrot.lane.b32.xlu0 %v2247_v42, %s2089_s0 }
 0x622   :  { %v632_v45 = vpop.xlane.xlu0 %631 }
 0x623   :  { %1969 = vrcp.f32 %v632_v45 }
 0x626   :  { %v810_v46 = vpop.xlane.xlu0 %809 }
 0x627   :  { %v811_v47 = vsub.f32 %v803_v38, %v810_v46 }
 0x629   :  { %v812_v48 = vmul.f32 1.442695, %v811_v47 }
 0x62a   :  { %v821_v54 = vpop.permute.xlu0 %820 }
 0x62b   :  { %1971 = vpow2.f32 %v812_v48  ;;  %v826_v58 = vsel %vm271_vm4, %v821_v54, 0 }
 0x62e   :  { %v1062_v1 = vpop.permute.xlu0 %1061 }
 0x62f   :  { %v1067_v2 = vsel %vm209_vm2, %v1062_v1, 0 }
 0x630   :  { %v1970_v44 = vpop.eup %1969 }
 0x631   :  { %v634_v49 = vmul.f32 %v1970_v44, %v1968_v37 }
 0x632   :  { %v1059_v3 = vpop.permute.xlu0 %1058 }
 0x633   :  { %v635_v21 = vpack.c.bf16 %v634_v49, %v634_v49 }
 0x635   :  { %1840 = vmatmul.mubr.msk.bf16.vlgmr.msra.gmra.mxu1 %vm209_vm2, %v635_v21 }
 0x636   :  { %1845 = vmatprep.mubr.msk.f32.mxu1 %vm2088_vm1, %v2087_v6  ;;  %1844 = vmatpush3.msra.mxu1 %v2255_v51 }
 0x637   :  { %1854 = vmatprep.subr.bf16.mxu1 %v2087_v6 }
 0x638   :  { %v1972_v50 = vpop.eup %1971 }
 0x639   :  { %v814_v20 = vsel %vm209_vm2, %v1972_v50, 0.0 }
 0x63a   :  { %815 = vadd.xlane.f32.xlu1 %v814_v20 }
 0x6c3   :  { %v816_v52 = vpop.xlane.xlu1 %815 }
 0x6c4   :  { %1973 = vrcp.f32 %v816_v52 }
 0x6d1   :  { %v1974_v53 = vpop.eup %1973 }
 0x6d2   :  { %v818_v55 = vmul.f32 %v1974_v53, %v1972_v50 }
 0x6d4   :  { %v819_v60 = vpack.c.bf16 %v818_v55, %v818_v55 }
 0x6f5   :  { %v678_v57 = vpop.f32.mrf.mxu1 }
 0x6f6   :  { %1846 = vmatmul.mubr.msk.f32.vlgmr.msra.gmra.mxu1 %vm209_vm2, %v678_v57 }
 0x6f7   :  { %1855 = vmatpush3.bf16.msra.mxu1 %v826_v58  ;;  %v1841_v59 = vpop.f32.mrf.mxu1  ;;  %1856 = vmatprep.mubr.msk.bf16.mxu1 %vm2088_vm1, %v2087_v6 }
 0x6f8   :  { %1865 = vmatprep.subr.bf16.mxu1 %v2087_v6 }
 0x6f9   :  { %v681_v61 = vpop.f32.mrf.mxu1 }
 0x6fa   :  { %1857 = vmatmul.mubr.msk.bf16.vlgmr.msra.gmra.mxu1 %vm209_vm2, %v819_v60 }
 0x6fb   :  { %1866 = vmatpush3.bf16.xpose.msra.mxu1 %v957_v62  ;;  %v1842_v0 = vpop.f32.mrf.mxu1  ;;  %1867 = vmatprep.mubr.msk.bf16.mxu1 %vm2088_vm1, %v2087_v6 }
 0x6fc   :  { %1877 = vmatprep.subr.bf16.mxu1 %v2087_v6 }
 0x702   :  { %1868 = vmatmul.mubr.msk.bf16.vlgmr.msra.gmra.mxu1 %vm209_vm2, %v2247_v42 }
 0x703   :  { %1878 = vmatpush3.bf16.xpose.msra.mxu1 %v1067_v2  ;;  %1879 = vmatprep.mubr.msk.bf16.mxu1 %vm2088_vm1, %v2087_v6 }
 0x704   :  { %1889 = vmatprep.subr.mxu1 %v2087_v6 }
 0x70a   :  { %1880 = vmatmul.mubr.msk.bf16.vlgmr.msra.gmra.mxu1 %vm209_vm2, %v1059_v3 }
 0x70b   :  { %1890 = vmatpush3.msra.mxu1 %v2195_v56  ;;  %1891 = vmatprep.mubr.msk.f32.mxu1 %vm2088_vm1, %v2087_v6 }
 0x70c   :  { %1899 = vmatprep.subr.bf16.mxu1 %v2087_v6 }
 0x7b6   :  { %v753_v7 = vpop.f32.mrf.mxu1 }
 0x7b7   :  { %v757_v56 = vadd.f32 %v753_v7, %v571_v5 }
 0x7b8   :  { %v1847_v9 = vpop.f32.mrf.mxu1 }
 0x7ba   :  { %v862_v10 = vpop.f32.mrf.mxu1 }
 0x7bb   :  { %1863 = vmatmul.mubr.msk.f32.vlgmr.msra.gmra.mxu0 %vm209_vm2, %v862_v10 }
 0x7bc   :  { %1872 = vmatpush3.bf16.msra.mxu0 %v1015_v11  ;;  %v1858_v12 = vpop.f32.mrf.mxu1  ;;  %1873 = vmatprep.mubr.msk.bf16.mxu0 %vm2088_vm1, %v2087_v6 }
 0x7bd   :  { %1883 = vmatprep.subr.bf16.mxu0 %v2087_v6 }
 0x7be   :  { %v865_v13 = vpop.f32.mrf.mxu1 }
 0x7c0   :  { %v1859_v14 = vpop.f32.mrf.mxu1 }
 0x7c2   :  { %v993_v15 = vpop.f32.mrf.mxu1 }
 0x7c3   :  { %v994_v43 = vadd.f32 %v993_v15, %v2167_v23 }
 0x7c4   :  { %v1869_v16 = vpop.f32.mrf.mxu1 }
 0x7c5   :  { %v999_v17 = vsel %vm209_vm2, %v994_v43, -inf }
 0x7c6   :  { %1000 = vmax.xlane.f32.xlu0 %v999_v17  ;;  %v996_v18 = vpop.f32.mrf.mxu1 }
 0x7c8   :  { %v1870_v19 = vpop.f32.mrf.mxu1 }
 0x7ca   :  { %v1103_v22 = vpop.f32.mrf.mxu1 }
 0x7cb   :  { %v1104_v24 = vadd.f32 %v1103_v22, %v2167_v23 }
 0x7cc   :  { %v1881_v25 = vpop.f32.mrf.mxu1 }
 0x7cd   :  { %v1109_v26 = vsel %vm209_vm2, %v1104_v24, -inf }
 0x7ce   :  { %1110 = vmax.xlane.f32.xlu1 %v1109_v26  ;;  %v1106_v27 = vpop.f32.mrf.mxu1 }
 0x7d0   :  { %v1882_v28 = vpop.f32.mrf.mxu1 }
 0x7dc   :  { %1318 = vrot.lane.b32.xlu0 %v2241_v41, %s2092_s9 }
 0x84f   :  { %v1001_v29 = vpop.xlane.xlu0 %1000 }
 0x850   :  { %v1002_v30 = vsub.f32 %v994_v43, %v1001_v29 }
 0x852   :  { %v1003_v31 = vmul.f32 1.442695, %v1002_v30 }
 0x853   :  { %v1319_v58 = vpop.permute.xlu0 %1318 }
 0x854   :  { %1975 = vpow2.f32 %v1003_v31  ;;  %v1324_v62 = vsel %vm209_vm2, %v1319_v58, 0 }
 0x857   :  { %v1111_v32 = vpop.xlane.xlu1 %1110 }
 0x858   :  { %v1112_v33 = vsub.f32 %v1104_v24, %v1111_v32 }
 0x85a   :  { %v1113_v34 = vmul.f32 1.442695, %v1112_v33 }
 0x85c   :  { %1977 = vpow2.f32 %v1113_v34 }
 0x861   :  { %v1976_v35 = vpop.eup %1975 }
 0x862   :  { %v1005_v36 = vsel %vm209_vm2, %v1976_v35, 0.0 }
 0x863   :  { %1006 = vadd.xlane.f32.xlu1 %v1005_v36 }
 0x869   :  { %v1978_v37 = vpop.eup %1977 }
 0x86a   :  { %v1115_v38 = vsel %vm209_vm2, %v1978_v37, 0.0 }
 0x86b   :  { %1116 = vadd.xlane.f32.xlu1 %v1115_v38 }
 0x87b   :  { %v937_v40 = vpop.f32.mrf.mxu0 }
 0x87c   :  { %v941_v45 = vadd.f32 %v937_v40, %v757_v56  ;;  %1122 = vrot.lane.b32.xlu1 %v2289_v8, %s2089_s0 }
 0x87d   :  { %v1864_v46 = vpop.f32.mrf.mxu0 }
 0x87e   :  { %v948_v47 = vadd.f32 %v2308_v39, %v941_v45 }
 0x880   :  { %949 = vst.msk [vmem:[#allocation8] sm:$0xff] %vm112_vm0, %v948_v47  ;;  %1316 = vrot.lane.b32.xlu1 %v2247_v42, %s2092_s9 }
 0x884   :  { %1502 = vrot.lane.b32.xlu1 %v2241_v41, %s2091_s2 }
 0x888   :  { %1500 = vrot.lane.b32.xlu1 %v2247_v42, %s2091_s2 }
 0x8ec   :  { %v1007_v48 = vpop.xlane.xlu1 %1006 }
 0x8ed   :  { %1979 = vrcp.f32 %v1007_v48 }
 0x8f4   :  { %v1117_v44 = vpop.xlane.xlu1 %1116 }
 0x8f5   :  { %1981 = vrcp.f32 %v1117_v44 }
 0x8f8   :  { %v1123_v50 = vpop.permute.xlu1 %1122 }
 0x8f9   :  { %v1128_v52 = vsel %vm271_vm4, %v1123_v50, 0 }
 0x8fa   :  { %v1980_v49 = vpop.eup %1979 }
 0x8fb   :  { %v1009_v21 = vmul.f32 %v1980_v49, %v1976_v35 }
 0x8fc   :  { %v1317_v60 = vpop.permute.xlu1 %1316 }
 0x8fd   :  { %v1010_v20 = vpack.c.bf16 %v1009_v21, %v1009_v21 }
 0x8ff   :  { %1874 = vmatmul.mubr.msk.bf16.vlgmr.msra.gmra.mxu0 %vm209_vm2, %v1010_v20 }
 0x900   :  { %1884 = vmatpush3.bf16.msra.mxu0 %v1128_v52  ;;  %1885 = vmatprep.mubr.msk.bf16.mxu0 %vm2088_vm1, %v2087_v6  ;;  %v1503_v1 = vpop.permute.xlu1 %1502 }
 0x901   :  { %1894 = vmatprep.subr.mxu0 %v2087_v6  ;;  %v1508_v3 = vsel %vm209_vm2, %v1503_v1, 0 }
 0x902   :  { %v1982_v41 = vpop.eup %1981 }
 0x903   :  { %v1119_v42 = vmul.f32 %v1982_v41, %v1978_v37 }
 0x904   :  { %v1501_v5 = vpop.permute.xlu1 %1500 }
 0x905   :  { %v1120_v53 = vpack.c.bf16 %v1119_v42, %v1119_v42 }
 0x907   :  { %1886 = vmatmul.mubr.msk.bf16.vlgmr.msra.gmra.mxu0 %vm209_vm2, %v1120_v53 }
 0x908   :  { %1895 = vmatpush3.msra.mxu0 %v2201_v63  ;;  %1896 = vmatprep.mubr.msk.f32.mxu0 %vm2088_vm1, %v2087_v6 }
 0x909   :  { %1905 = vmatprep.subr.bf16.mxu0 %v2087_v6 }
 0x9bf   :  { %v1051_v54 = vpop.f32.mrf.mxu0 }
 0x9c0   :  { %1897 = vmatmul.mubr.msk.f32.vlgmr.msra.gmra.mxu0 %vm209_vm2, %v1051_v54 }
 0x9c1   :  { %v1875_v55 = vpop.f32.mrf.mxu0  ;;  %1907 = vmatprep.mubr.msk.bf16.mxu0 %vm2088_vm1, %v2087_v6 }
 0x9c3   :  { %v1054_v57 = vpop.f32.mrf.mxu0 }
 0x9c5   :  { %v1876_v59 = vpop.f32.mrf.mxu0 }
 0x9c7   :  { %v1164_v61 = vpop.f32.mrf.mxu0 }
 0x9c8   :  { %1892 = vmatmul.mubr.msk.f32.vlgmr.msra.gmra.mxu1 %vm209_vm2, %v1164_v61 }
 0x9c9   :  { %1900 = vmatpush3.bf16.xpose.msra.mxu1 %v1324_v62  ;;  %v1887_v63 = vpop.f32.mrf.mxu0  ;;  %1901 = vmatprep.mubr.msk.bf16.mxu1 %vm2088_vm1, %v2087_v6 }
 0x9ca   :  { %1916 = vmatprep.subr.bf16.mxu1 %v2087_v6 }
 0x9cb   :  { %v1167_v0 = vpop.f32.mrf.mxu0 }
 0x9cd   :  { %v1888_v2 = vpop.f32.mrf.mxu0 }
 0x9d0   :  { %1902 = vmatmul.mubr.msk.bf16.vlgmr.msra.gmra.mxu1 %vm209_vm2, %v1317_v60 }
 0x9d1   :  { %1917 = vmatpush3.bf16.xpose.msra.mxu1 %v1508_v3  ;;  %1918 = vmatprep.mubr.msk.bf16.mxu1 %vm2088_vm1, %v2087_v6 }
 0x9d2   :  { %1928 = vmatprep.subr.mxu1 %v2087_v6 }
 0x9d8   :  { %1919 = vmatmul.mubr.msk.bf16.vlgmr.msra.gmra.mxu1 %vm209_vm2, %v1501_v5 }
 0x9d9   :  { %1929 = vmatpush3.msra.mxu1 %v2281_v4  ;;  %1930 = vmatprep.mubr.msk.f32.mxu1 %vm2088_vm1, %v2087_v6 }
 0xa80   :  { %v1312_v7 = vpop.f32.mrf.mxu0 }
 0xa82   :  { %v1898_v56 = vpop.f32.mrf.mxu0 }
 0xa88   :  { %v1239_v9 = vpop.f32.mrf.mxu1 }
 0xa89   :  { %v1313_v10 = vadd.f32 %v1312_v7, %v1239_v9 }
 0xa8a   :  { %v1893_v11 = vpop.f32.mrf.mxu1 }
 0xa90   :  { %v1360_v12 = vpop.f32.mrf.mxu1 }
 0xa91   :  { %v1361_v13 = vadd.f32 %v1360_v12, %v2167_v23 }
 0xa92   :  { %v1903_v14 = vpop.f32.mrf.mxu1 }
 0xa93   :  { %v1366_v15 = vsel %vm209_vm2, %v1361_v13, -inf }
 0xa94   :  { %1367 = vmax.xlane.f32.xlu1 %v1366_v15  ;;  %v1363_v43 = vpop.f32.mrf.mxu1 }
 0xa96   :  { %v1904_v16 = vpop.f32.mrf.mxu1 }
 0xa98   :  { %v1544_v17 = vpop.f32.mrf.mxu1 }
 0xa99   :  { %v1545_v29 = vadd.f32 %v1544_v17, %v2167_v23 }
 0xa9a   :  { %v1920_v18 = vpop.f32.mrf.mxu1 }
 0xa9b   :  { %v1550_v31 = vsel %vm209_vm2, %v1545_v29, -inf }
 0xa9c   :  { %v1547_v4 = vpop.f32.mrf.mxu1 }
 0xa9e   :  { %v1921_v19 = vpop.f32.mrf.mxu1 }
 0xaa5   :  { %1378 = vrot.lane.b32.xlu1 %v2289_v8, %s2092_s9 }
 0xb1d   :  { %v1368_v22 = vpop.xlane.xlu1 %1367 }
 0xb1e   :  { %v1369_v24 = vsub.f32 %v1361_v13, %v1368_v22 }
 0xb20   :  { %v1370_v25 = vmul.f32 1.442695, %v1369_v24 }
 0xb21   :  { %v1379_v26 = vpop.permute.xlu1 %1378 }
 0xb22   :  { %1983 = vpow2.f32 %v1370_v25  ;;  %v1384_v27 = vsel %vm271_vm4, %v1379_v26, 0 }
 0xb23   :  { %1906 = vmatpush3.bf16.msra.mxu0 %v1384_v27 }
 0xb24   :  { %1911 = vmatprep.subr.mxu0 %v2087_v6 }
 0xb2f   :  { %v1984_v28 = vpop.eup %1983 }
 0xb30   :  { %v1372_v30 = vsel %vm209_vm2, %v1984_v28, 0.0 }
 0xb31   :  { %1373 = vadd.xlane.f32.xlu0 %v1372_v30 }
 0xb35   :  { %1551 = vmax.xlane.f32.xlu0 %v1550_v31 }
 0xbba   :  { %v1374_v32 = vpop.xlane.xlu0 %1373 }
 0xbbb   :  { %1985 = vrcp.f32 %v1374_v32 }
 0xbbe   :  { %v1552_v33 = vpop.xlane.xlu0 %1551 }
 0xbbf   :  { %v1553_v34 = vsub.f32 %v1545_v29, %v1552_v33 }
 0xbc1   :  { %v1554_v35 = vmul.f32 1.442695, %v1553_v34 }
 0xbc3   :  { %1987 = vpow2.f32 %v1554_v35 }
 0xbc8   :  { %v1986_v36 = vpop.eup %1985 }
 0xbc9   :  { %v1376_v37 = vmul.f32 %v1986_v36, %v1984_v28 }
 0xbcb   :  { %v1377_v38 = vpack.c.bf16 %v1376_v37, %v1376_v37 }
 0xbcd   :  { %1908 = vmatmul.mubr.msk.bf16.vlgmr.msra.gmra.mxu0 %vm209_vm2, %v1377_v38 }
 0xbce   :  { %1912 = vmatpush3.msra.mxu0 %v2255_v51  ;;  %1913 = vmatprep.mubr.msk.f32.mxu0 %vm2088_vm1, %v2087_v6 }
 0xbcf   :  { %1922 = vmatprep.subr.bf16.mxu0 %v2087_v6 }
 0xbd0   :  { %v1988_v23 = vpop.eup %1987 }
 0xbd1   :  { %v1556_v40 = vsel %vm209_vm2, %v1988_v23, 0.0 }
 0xbd2   :  { %1557 = vadd.xlane.f32.xlu0 %v1556_v40 }
 0xbe8   :  { %1562 = vrot.lane.b32.xlu0 %v2289_v8, %s2091_s2 }
 0xc5b   :  { %v1558_v45 = vpop.xlane.xlu0 %1557 }
 0xc5c   :  { %1989 = vrcp.f32 %v1558_v45 }
 0xc5f   :  { %v1563_v47 = vpop.permute.xlu0 %1562 }
 0xc60   :  { %v1568_v51 = vsel %vm271_vm4, %v1563_v47, 0 }
 0xc69   :  { %v1990_v46 = vpop.eup %1989 }
 0xc6a   :  { %v1560_v48 = vmul.f32 %v1990_v46, %v1988_v23 }
 0xc6c   :  { %v1561_v21 = vpack.c.bf16 %v1560_v48, %v1560_v48 }
 0xc8d   :  { %v1420_v44 = vpop.f32.mrf.mxu0 }
 0xc8e   :  { %1914 = vmatmul.mubr.msk.f32.vlgmr.msra.gmra.mxu0 %vm209_vm2, %v1420_v44 }
 0xc8f   :  { %1923 = vmatpush3.bf16.msra.mxu0 %v1568_v51  ;;  %v1909_v49 = vpop.f32.mrf.mxu0  ;;  %1924 = vmatprep.mubr.msk.bf16.mxu0 %vm2088_vm1, %v2087_v6 }
 0xc91   :  { %v1423_v50 = vpop.f32.mrf.mxu0 }
 0xc92   :  { %1925 = vmatmul.mubr.msk.bf16.vlgmr.msra.gmra.mxu0 %vm209_vm2, %v1561_v21 }
 0xc93   :  { %v1910_v8 = vpop.f32.mrf.mxu0 }
 0xd4e   :  { %v1495_v20 = vpop.f32.mrf.mxu0 }
 0xd4f   :  { %v1499_v52 = vadd.f32 %v1495_v20, %v1313_v10 }
 0xd50   :  { %v1915_v41 = vpop.f32.mrf.mxu0 }
 0xd52   :  { %v1604_v42 = vpop.f32.mrf.mxu0 }
 0xd53   :  { %1931 = vmatmul.mubr.msk.f32.vlgmr.msra.gmra.mxu1 %vm209_vm2, %v1604_v42 }
 0xd54   :  { %v1926_v53 = vpop.f32.mrf.mxu0 }
 0xd56   :  { %v1607_v54 = vpop.f32.mrf.mxu0 }
 0xd58   :  { %v1927_v55 = vpop.f32.mrf.mxu0 }
 0xe13   :  { %v1679_v57 = vpop.f32.mrf.mxu1 }
 0xe14   :  { %v1683_v58 = vadd.f32 %v1679_v57, %v1499_v52 }
 0xe15   :  { %v1932_v59 = vpop.f32.mrf.mxu1 }
 0xe16   :  { %v1684_v6 = vadd.f32 %v2308_v39, %v1683_v58 }
 0xe18   :  { %1685 = vst.msk [vmem:[#allocation8 + $0x8] sm:$0xff] %vm112_vm0, %v1684_v6 }
 0xe19   :  { %2062 = shalt.err (!%p2059_p5)
}
 0xe1a   :  { %1697 = dma.vmem_to_hbm [thread:$0]  %s1692_s12, 256, %s2382_s4, [#allocation4], %s2084_s5, %s2084_s5, %s2085_s6  }
 0xe1b   :  { %2075 = dma.done.wait [#allocation4], 256  }
 0xe1c   :  { %2076 = vsyncadd [#allocation4], 4294967040 }
 0xe1d   :  { %1701 = vsyncpa [#allocation3], 1 }
 0xe1e   :  { %1702 = vsyncpa [#allocation6], 1 }
 0xe1f   :  { %1703 = vsyncpa [#allocation4], 1 }

</bundles_post_ra>
